<compile_context>
chip_gen: v5e
topology: v5e:2x2
jax: 0.10.0
libtpu: 0.0.40
codegen_flags: <defaults>
</compile_context>

<pallas_src>
import jax
import jax.numpy as jnp
from jax.experimental import pallas as pl
from jax.experimental.pallas import tpu as pltpu


def _linear_kernel(x_ref, w_ref, b_ref, o_ref):
    # One shot: (tm, K) @ (K, N) + (1, N) -> (tm, N)
    o_ref[...] = (
        jnp.dot(x_ref[...], w_ref[...], preferred_element_type=jnp.float32)
        + b_ref[...]
    ).astype(o_ref.dtype)


def linear_norm_pallas(x, weight, bias, *, tm=512):
    """y = x @ weight + bias   (weight already [K, N] = torch W.T)."""
    M, K = x.shape
    Kw, N = weight.shape
    assert K == Kw, f"feature-dim mismatch: {K} vs {Kw}"
    bias2d = bias.reshape(1, N)

    # Row-tile size: full M for small inputs (full-extent block always legal),
    # otherwise a 512-row tile (multiple of 8 sublanes); partial trailing
    # blocks are masked by Pallas via cdiv.
    tm_eff = M if M <= tm else tm
    grid_m = pl.cdiv(M, tm_eff)

    return pl.pallas_call(
        _linear_kernel,
        out_shape=jax.ShapeDtypeStruct((M, N), x.dtype),
        grid_spec=pltpu.PrefetchScalarGridSpec(
            num_scalar_prefetch=0,
            grid=(grid_m,),
            in_specs=[
                pl.BlockSpec((tm_eff, K), lambda i: (i, 0)),  # x row tile
                pl.BlockSpec((K, N), lambda i: (0, 0)),       # full weight (resident)
                pl.BlockSpec((1, N), lambda i: (0, 0)),       # bias (resident)
            ],
            out_specs=pl.BlockSpec((tm_eff, N), lambda i: (i, 0)),
        ),
        compiler_params=pltpu.CompilerParams(
            dimension_semantics=("parallel",),  # shard rows across TCs (v7x)
            vmem_limit_bytes=64 << 20,
        ),
    )(x, weight, bias2d)


class LinearNormPallas:
    """JAX/Pallas equivalent of the PyTorch LinearNorm module."""

    def __init__(self, lstm_hidden, emb_dim, key):
        k_w, k_b = jax.random.split(key)
        # Match torch.nn.Linear default init: U(-1/sqrt(fan_in), 1/sqrt(fan_in))
        bound = 1.0 / (lstm_hidden ** 0.5)
        # torch stores W as [out, in]; we keep the transposed [in, out] layout.
        # (Could be stored bf16 to halve HBM traffic if accuracy budget allows.)
        self.weight_t = jax.random.uniform(
            k_w, (lstm_hidden, emb_dim), jnp.float32, -bound, bound
        )
        self.bias = jax.random.uniform(
            k_b, (emb_dim,), jnp.float32, -bound, bound
        )

    def __call__(self, x):
        # x: [..., lstm_hidden] -> [..., emb_dim]  (matches nn.Linear broadcasting)
        lead = x.shape[:-1]
        K = x.shape[-1]
        x2d = x.reshape(-1, K)
        y2d = linear_norm_pallas(x2d, self.weight_t, self.bias)
        return y2d.reshape(*lead, self.bias.shape[0])


if __name__ == "__main__":
    lstm_hidden = 768
    emb_dim = 256
    batch, seq = 2, 8  # small leading dims -> M = 16 (single full-extent tile)

    key = jax.random.PRNGKey(0)
    k_x, k_p = jax.random.split(key)
    x = jax.random.normal(k_x, (batch, seq, lstm_hidden), jnp.float32)

    module = LinearNormPallas(lstm_hidden, emb_dim, k_p)
    y = module(x)
    y = jax.block_until_ready(y)

    # Reference check against plain JAX
    y_ref = x @ module.weight_t + module.bias
    assert y.shape == (batch, seq, emb_dim)
    assert jnp.allclose(y, y_ref, atol=1e-4, rtol=1e-4)

    print("KERNEL_OK")
</pallas_src>

<mosaic_0001>
module attributes {stable_mosaic.version = 11 : i64} {
  func.func @_linear_kernel(%arg0: i32, %arg1: memref<16x768xf32, #tpu.memory_space<vmem>>, %arg2: memref<768x256xf32, #tpu.memory_space<vmem>>, %arg3: memref<1x256xf32, #tpu.memory_space<vmem>>, %arg4: memref<16x256xf32, #tpu.memory_space<vmem>>) attributes {dimension_semantics = [#tpu.dimension_semantics<parallel>], iteration_bounds = array<i64: 1>, scalar_prefetch = 0 : i64, scratch_operands = 0 : i64, tpu.core_type = #tpu.core_type<tc>, window_params = [{transform_indices = @transform_0, window_bounds = array<i64: 16, 768>}, {pipeline_mode = #tpu.pipeline_mode<synchronous>, transform_indices = @transform_1, window_bounds = array<i64: 768, 256>}, {pipeline_mode = #tpu.pipeline_mode<synchronous>, transform_indices = @transform_2, window_bounds = array<i64: 1, 256>}, {transform_indices = @transform_3, window_bounds = array<i64: 16, 256>}]} {
    %c0 = arith.constant 0 : index
    %c0_0 = arith.constant 0 : index
    %0 = vector.load %arg1[%c0, %c0_0] : memref<16x768xf32, #tpu.memory_space<vmem>>, vector<16x768xf32>
    %c0_1 = arith.constant 0 : index
    %c0_2 = arith.constant 0 : index
    %1 = vector.load %arg2[%c0_1, %c0_2] : memref<768x256xf32, #tpu.memory_space<vmem>>, vector<768x256xf32>
    %cst = arith.constant dense<0.000000e+00> : vector<16x256xf32>
    %2 = tpu.matmul %0, %1, %cst {dimension_numbers = #tpu.dot_dimension_numbers<[1], [0], [0], [1], [0, 0, 1, 1], [], []>} : vector<16x768xf32>, vector<768x256xf32>, vector<16x256xf32> -> vector<16x256xf32>
    %c0_3 = arith.constant 0 : index
    %c0_4 = arith.constant 0 : index
    %3 = vector.load %arg3[%c0_3, %c0_4] : memref<1x256xf32, #tpu.memory_space<vmem>>, vector<1x256xf32>
    %4 = vector.broadcast %3 : vector<1x256xf32> to vector<16x256xf32>
    %5 = arith.addf %2, %4 : vector<16x256xf32>
    %c0_5 = arith.constant 0 : index
    %c0_6 = arith.constant 0 : index
    %6 = vector.load %arg4[%c0_5, %c0_6] : memref<16x256xf32, #tpu.memory_space<vmem>>, vector<16x256xf32>
    tpu.vector_store %arg4[%c0_5, %c0_6], %5 {strides = array<i32>} : memref<16x256xf32, #tpu.memory_space<vmem>>, vector<16x256xf32>,
    return
  }
  func.func @transform_0(%arg0: i32) -> (i32, i32) {
    %c0_i32 = arith.constant 0 : i32
    %c0_i32_0 = arith.constant 0 : i32
    return %arg0, %c0_i32 : i32, i32
  }
  func.func @transform_1(%arg0: i32) -> (i32, i32) {
    %c0_i32 = arith.constant 0 : i32
    %c0_i32_0 = arith.constant 0 : i32
    %c0_i32_1 = arith.constant 0 : i32
    return %c0_i32, %c0_i32_0 : i32, i32
  }
  func.func @transform_2(%arg0: i32) -> (i32, i32) {
    %c0_i32 = arith.constant 0 : i32
    %c0_i32_0 = arith.constant 0 : i32
    %c0_i32_1 = arith.constant 0 : i32
    return %c0_i32, %c0_i32_0 : i32, i32
  }
  func.func @transform_3(%arg0: i32) -> (i32, i32) {
    %c0_i32 = arith.constant 0 : i32
    %c0_i32_0 = arith.constant 0 : i32
    return %arg0, %c0_i32 : i32, i32
  }
}

</mosaic_0001>

<bundles_post_ra>
// kernel: tpu_custom_call.1
= control target key start
LH: loop header
LB: loop body
LE: loop exit
PB: predicated region body
PF: predicated region fallthrough
CT: control target
= control target key end

     0   :  { %8 = vsyncpa [#allocation3], 0  ;;  %s774_s0 = inlined_call_operand.hbm [shape: f32[16,768], index: 0, kind: input, shape index: {}]   ;;  %s775_s1 = inlined_call_operand.hbm [shape: f32[768,256], index: 1, kind: input, shape index: {}]   ;;  %s776_s2 = inlined_call_operand.hbm [shape: f32[1,256], index: 2, kind: input, shape index: {}]   ;;  %s777_s3 = inlined_call_operand.hbm [shape: f32[16,256], index: 3, kind: output, shape index: {}]  }
   0x1   :  { %9 = vsyncpa [#allocation6], 0  ;;  %s28_s14 = sshll.u32 %s775_s1, 4  ;;  %s29_s14 = int_to_ptr.hbm [resolvable:$true] %s28_s14 }
   0x2   :  { %10 = vsyncpa [#allocation4], 0  ;;  %s680_s15 = smov [#allocation5]   ;;  %s15_s19 = sshll.u32 %s774_s0, 4  ;;  %s16_s19 = int_to_ptr.hbm [resolvable:$true] %s15_s19 }
   0x3   :  { %s30_s16 = sshll.u32 %s680_s15, 4  ;;  %s681_s20 = smov 256   ;;  %s31_s16 = int_to_ptr.vmem [resolvable:$true] %s30_s16 }
   0x4   :  { %s682_s21 = smov 16   ;;  %s683_s22 = smov [#allocation2]  }
   0x5   :  { %36 = dma.hbm_to_vmem [thread:$0]  %s29_s14, 24576, %s31_s16, [#allocation6], %s681_s20, %s681_s20, %s682_s21  }
   0x6   :  { %s17_s23 = sshll.u32 %s683_s22, 4  ;;  %s684_s1 = smov 768   ;;  %s18_s23 = int_to_ptr.vmem [resolvable:$true] %s17_s23 }
   0x7   :  { %s685_s24 = smov 48   ;;  %s42_s27 = sshll.u32 %s776_s2, 4  ;;  %s43_s27 = int_to_ptr.hbm [resolvable:$true] %s42_s27 }
   0x8   :  { %23 = dma.hbm_to_vmem [thread:$0]  %s16_s19, 1536, %s18_s23, [#allocation3], %s684_s1, %s684_s1, %s685_s24  }
   0x9   :  { %s686_s28 = smov [#allocation7]  }
   0xa   :  { %s44_s0 = sshll.u32 %s686_s28, 4  ;;  %s45_s0 = int_to_ptr.vmem [resolvable:$true] %s44_s0 }
   0xb   :  { %47 = dma.hbm_to_vmem [thread:$0]  %s43_s27, 32, %s45_s0, [#allocation6]  }
   0xc   :  { %674 = dma.done.wait [#allocation3], 1536  }
   0xd   :  { %675 = vsyncadd [#allocation3], 4294965760 }
   0xe   :  { %676 = dma.done.wait [#allocation6], 24608  }
   0xf   :  { %677 = vsyncadd [#allocation6], 4294942688  ;;  %v102_v0 = vld [vmem:[#allocation5 + $0xf0] sm:$0xff]  ;;  %v100_v2 = vld [vmem:[#allocation5 + $0xe0] sm:$0xff]  ;;  %s687_s2 = smov [#allocation8]   ;;  %s556_s5 = sshll.u32 %s777_s3, 4  ;;  %s557_s5 = int_to_ptr.hbm [resolvable:$true] %s556_s5 }
  0x10   :  { %v166_v1 = vld [vmem:[#allocation5 + $0x2f0] sm:$0xff]  ;;  %270 = vmatpush.msra.mxu0 %v102_v0  ;;  %v164_v4 = vld [vmem:[#allocation5 + $0x2e0] sm:$0xff]  ;;  %v103_v63 = vld [vmem:[#allocation5 + $0xf8] sm:$0xff]  ;;  %s554_s29 = sshll.u32 %s687_s2, 4  ;;  %s555_s29 = int_to_ptr.vmem [resolvable:$true] %s554_s29 }
  0x11   :  { %316 = vmatpush.msra.mxu2 %v166_v1  ;;  %v134_v3 = vld [vmem:[#allocation5 + $0x1f0] sm:$0xff]  ;;  %v132_v7 = vld [vmem:[#allocation5 + $0x1e0] sm:$0xff] }
  0x12   :  { %v198_v5 = vld [vmem:[#allocation5 + $0x3f0] sm:$0xff]  ;;  %293 = vmatpush.msra.mxu1 %v134_v3  ;;  %271 = vmatpush.msra.mxu0 %v100_v2  ;;  %v196_v9 = vld [vmem:[#allocation5 + $0x3e0] sm:$0xff] }
  0x13   :  { %339 = vmatpush.msra.mxu3 %v198_v5  ;;  %v98_v6 = vld [vmem:[#allocation5 + $0xd0] sm:$0xff]  ;;  %317 = vmatpush.msra.mxu2 %v164_v4  ;;  %v96_v11 = vld [vmem:[#allocation5 + $0xc0] sm:$0xff]  ;;  %v101_v4 = vld [vmem:[#allocation5 + $0xe8] sm:$0xff] }
  0x14   :  { %v162_v8 = vld [vmem:[#allocation5 + $0x2d0] sm:$0xff]  ;;  %294 = vmatpush.msra.mxu1 %v132_v7  ;;  %v160_v12 = vld [vmem:[#allocation5 + $0x2c0] sm:$0xff]  ;;  %272 = vmatpush.msra.mxu0 %v98_v6  ;;  %v135_v5 = vld [vmem:[#allocation5 + $0x1f8] sm:$0xff] }
  0x15   :  { %v130_v10 = vld [vmem:[#allocation5 + $0x1d0] sm:$0xff]  ;;  %340 = vmatpush.msra.mxu3 %v196_v9  ;;  %318 = vmatpush.msra.mxu2 %v162_v8  ;;  %v128_v14 = vld [vmem:[#allocation5 + $0x1c0] sm:$0xff]  ;;  %v99_v8 = vld [vmem:[#allocation5 + $0xd8] sm:$0xff] }
  0x16   :  { %v194_v13 = vld [vmem:[#allocation5 + $0x3d0] sm:$0xff]  ;;  %v192_v15 = vld [vmem:[#allocation5 + $0x3c0] sm:$0xff]  ;;  %295 = vmatpush.msra.mxu1 %v130_v10  ;;  %273 = vmatpush.msra.mxu0 %v96_v11  ;;  %v133_v9 = vld [vmem:[#allocation5 + $0x1e8] sm:$0xff] }
  0x17   :  { %341 = vmatpush.msra.mxu3 %v194_v13  ;;  %v94_v16 = vld [vmem:[#allocation5 + $0xb0] sm:$0xff]  ;;  %319 = vmatpush.msra.mxu2 %v160_v12  ;;  %v92_v20 = vld [vmem:[#allocation5 + $0xa0] sm:$0xff]  ;;  %v97_v12 = vld [vmem:[#allocation5 + $0xc8] sm:$0xff] }
  0x18   :  { %v158_v17 = vld [vmem:[#allocation5 + $0x2b0] sm:$0xff]  ;;  %296 = vmatpush.msra.mxu1 %v128_v14  ;;  %v156_v21 = vld [vmem:[#allocation5 + $0x2a0] sm:$0xff]  ;;  %274 = vmatpush.msra.mxu0 %v94_v16  ;;  %v131_v13 = vld [vmem:[#allocation5 + $0x1d8] sm:$0xff] }
  0x19   :  { %v126_v18 = vld [vmem:[#allocation5 + $0x1b0] sm:$0xff]  ;;  %342 = vmatpush.msra.mxu3 %v192_v15  ;;  %320 = vmatpush.msra.mxu2 %v158_v17  ;;  %v124_v22 = vld [vmem:[#allocation5 + $0x1a0] sm:$0xff]  ;;  %v95_v16 = vld [vmem:[#allocation5 + $0xb8] sm:$0xff] }
  0x1a   :  { %v190_v19 = vld [vmem:[#allocation5 + $0x3b0] sm:$0xff]  ;;  %v188_v23 = vld [vmem:[#allocation5 + $0x3a0] sm:$0xff]  ;;  %297 = vmatpush.msra.mxu1 %v126_v18  ;;  %275 = vmatpush.msra.mxu0 %v92_v20  ;;  %v129_v17 = vld [vmem:[#allocation5 + $0x1c8] sm:$0xff] }
  0x1b   :  { %343 = vmatpush.msra.mxu3 %v190_v19  ;;  %v90_v24 = vld [vmem:[#allocation5 + $0x90] sm:$0xff]  ;;  %321 = vmatpush.msra.mxu2 %v156_v21  ;;  %v88_v28 = vld [vmem:[#allocation5 + $0x80] sm:$0xff]  ;;  %v93_v20 = vld [vmem:[#allocation5 + $0xa8] sm:$0xff] }
  0x1c   :  { %v154_v25 = vld [vmem:[#allocation5 + $0x290] sm:$0xff]  ;;  %298 = vmatpush.msra.mxu1 %v124_v22  ;;  %v152_v29 = vld [vmem:[#allocation5 + $0x280] sm:$0xff]  ;;  %276 = vmatpush.msra.mxu0 %v90_v24  ;;  %v127_v21 = vld [vmem:[#allocation5 + $0x1b8] sm:$0xff] }
  0x1d   :  { %v122_v26 = vld [vmem:[#allocation5 + $0x190] sm:$0xff]  ;;  %344 = vmatpush.msra.mxu3 %v188_v23  ;;  %322 = vmatpush.msra.mxu2 %v154_v25  ;;  %v120_v30 = vld [vmem:[#allocation5 + $0x180] sm:$0xff]  ;;  %v91_v24 = vld [vmem:[#allocation5 + $0x98] sm:$0xff] }
  0x1e   :  { %v186_v27 = vld [vmem:[#allocation5 + $0x390] sm:$0xff]  ;;  %v184_v31 = vld [vmem:[#allocation5 + $0x380] sm:$0xff]  ;;  %299 = vmatpush.msra.mxu1 %v122_v26  ;;  %277 = vmatpush.msra.mxu0 %v88_v28  ;;  %v125_v25 = vld [vmem:[#allocation5 + $0x1a8] sm:$0xff] }
  0x1f   :  { %345 = vmatpush.msra.mxu3 %v186_v27  ;;  %v86_v32 = vld [vmem:[#allocation5 + $0x70] sm:$0xff]  ;;  %323 = vmatpush.msra.mxu2 %v152_v29  ;;  %v84_v36 = vld [vmem:[#allocation5 + $0x60] sm:$0xff]  ;;  %v89_v28 = vld [vmem:[#allocation5 + $0x88] sm:$0xff] }
  0x20   :  { %v150_v33 = vld [vmem:[#allocation5 + $0x270] sm:$0xff]  ;;  %300 = vmatpush.msra.mxu1 %v120_v30  ;;  %v148_v37 = vld [vmem:[#allocation5 + $0x260] sm:$0xff]  ;;  %278 = vmatpush.msra.mxu0 %v86_v32  ;;  %v123_v29 = vld [vmem:[#allocation5 + $0x198] sm:$0xff] }
  0x21   :  { %v118_v34 = vld [vmem:[#allocation5 + $0x170] sm:$0xff]  ;;  %346 = vmatpush.msra.mxu3 %v184_v31  ;;  %324 = vmatpush.msra.mxu2 %v150_v33  ;;  %v116_v38 = vld [vmem:[#allocation5 + $0x160] sm:$0xff]  ;;  %v87_v32 = vld [vmem:[#allocation5 + $0x78] sm:$0xff] }
  0x22   :  { %v182_v35 = vld [vmem:[#allocation5 + $0x370] sm:$0xff]  ;;  %v180_v39 = vld [vmem:[#allocation5 + $0x360] sm:$0xff]  ;;  %301 = vmatpush.msra.mxu1 %v118_v34  ;;  %279 = vmatpush.msra.mxu0 %v84_v36  ;;  %v121_v33 = vld [vmem:[#allocation5 + $0x188] sm:$0xff] }
  0x23   :  { %347 = vmatpush.msra.mxu3 %v182_v35  ;;  %v82_v40 = vld [vmem:[#allocation5 + $0x50] sm:$0xff]  ;;  %325 = vmatpush.msra.mxu2 %v148_v37  ;;  %v80_v44 = vld [vmem:[#allocation5 + $0x40] sm:$0xff]  ;;  %v85_v36 = vld [vmem:[#allocation5 + $0x68] sm:$0xff] }
  0x24   :  { %v146_v41 = vld [vmem:[#allocation5 + $0x250] sm:$0xff]  ;;  %302 = vmatpush.msra.mxu1 %v116_v38  ;;  %v144_v45 = vld [vmem:[#allocation5 + $0x240] sm:$0xff]  ;;  %280 = vmatpush.msra.mxu0 %v82_v40  ;;  %v119_v37 = vld [vmem:[#allocation5 + $0x178] sm:$0xff] }
  0x25   :  { %v114_v42 = vld [vmem:[#allocation5 + $0x150] sm:$0xff]  ;;  %348 = vmatpush.msra.mxu3 %v180_v39  ;;  %326 = vmatpush.msra.mxu2 %v146_v41  ;;  %v112_v46 = vld [vmem:[#allocation5 + $0x140] sm:$0xff]  ;;  %v83_v40 = vld [vmem:[#allocation5 + $0x58] sm:$0xff] }
  0x26   :  { %v178_v43 = vld [vmem:[#allocation5 + $0x350] sm:$0xff]  ;;  %v176_v47 = vld [vmem:[#allocation5 + $0x340] sm:$0xff]  ;;  %303 = vmatpush.msra.mxu1 %v114_v42  ;;  %281 = vmatpush.msra.mxu0 %v80_v44  ;;  %v117_v41 = vld [vmem:[#allocation5 + $0x168] sm:$0xff] }
  0x27   :  { %349 = vmatpush.msra.mxu3 %v178_v43  ;;  %v78_v48 = vld [vmem:[#allocation5 + $0x30] sm:$0xff]  ;;  %327 = vmatpush.msra.mxu2 %v144_v45  ;;  %v76_v52 = vld [vmem:[#allocation5 + $0x20] sm:$0xff]  ;;  %v81_v44 = vld [vmem:[#allocation5 + $0x48] sm:$0xff] }
  0x28   :  { %v142_v49 = vld [vmem:[#allocation5 + $0x230] sm:$0xff]  ;;  %304 = vmatpush.msra.mxu1 %v112_v46  ;;  %v140_v53 = vld [vmem:[#allocation5 + $0x220] sm:$0xff]  ;;  %282 = vmatpush.msra.mxu0 %v78_v48  ;;  %v115_v45 = vld [vmem:[#allocation5 + $0x158] sm:$0xff] }
  0x29   :  { %v110_v50 = vld [vmem:[#allocation5 + $0x130] sm:$0xff]  ;;  %350 = vmatpush.msra.mxu3 %v176_v47  ;;  %328 = vmatpush.msra.mxu2 %v142_v49  ;;  %v108_v54 = vld [vmem:[#allocation5 + $0x120] sm:$0xff]  ;;  %v79_v49 = vld [vmem:[#allocation5 + $0x38] sm:$0xff] }
  0x2a   :  { %v174_v51 = vld [vmem:[#allocation5 + $0x330] sm:$0xff]  ;;  %v172_v55 = vld [vmem:[#allocation5 + $0x320] sm:$0xff]  ;;  %305 = vmatpush.msra.mxu1 %v110_v50  ;;  %283 = vmatpush.msra.mxu0 %v76_v52  ;;  %v113_v50 = vld [vmem:[#allocation5 + $0x148] sm:$0xff] }
  0x2b   :  { %351 = vmatpush.msra.mxu3 %v174_v51  ;;  %v74_v56 = vld [vmem:[#allocation5 + $0x10] sm:$0xff]  ;;  %329 = vmatpush.msra.mxu2 %v140_v53  ;;  %v72_v60 = vld [vmem:[#allocation5] sm:$0xff]  ;;  %v722_v51 = vld [vmem:[#allocation2 + $0x8] sm:$0xff] }
  0x2c   :  { %v138_v57 = vld [vmem:[#allocation5 + $0x210] sm:$0xff]  ;;  %306 = vmatpush.msra.mxu1 %v108_v54  ;;  %v136_v61 = vld [vmem:[#allocation5 + $0x200] sm:$0xff]  ;;  %284 = vmatpush.msra.mxu0 %v74_v56  ;;  %v77_v54 = vld [vmem:[#allocation5 + $0x28] sm:$0xff] }
  0x2d   :  { %v106_v58 = vld [vmem:[#allocation5 + $0x110] sm:$0xff]  ;;  %352 = vmatpush.msra.mxu3 %v172_v55  ;;  %330 = vmatpush.msra.mxu2 %v138_v57  ;;  %v104_v0 = vld [vmem:[#allocation5 + $0x100] sm:$0xff]  ;;  %v111_v55 = vld [vmem:[#allocation5 + $0x138] sm:$0xff] }
  0x2e   :  { %v170_v59 = vld [vmem:[#allocation5 + $0x310] sm:$0xff]  ;;  %307 = vmatpush.msra.mxu1 %v106_v58  ;;  %v168_v1 = vld [vmem:[#allocation5 + $0x300] sm:$0xff]  ;;  %285 = vmatpush.msra.mxu0 %v72_v60  ;;  %v75_v58 = vld [vmem:[#allocation5 + $0x18] sm:$0xff] }
  0x2f   :  { %v230_v62 = vld [vmem:[#allocation5 + $0x4f0] sm:$0xff]  ;;  %353 = vmatpush.msra.mxu3 %v170_v59  ;;  %331 = vmatpush.msra.mxu2 %v136_v61  ;;  %v228_v2 = vld [vmem:[#allocation5 + $0x4e0] sm:$0xff]  ;;  %v109_v59 = vld [vmem:[#allocation5 + $0x128] sm:$0xff] }
  0x30   :  { %v262_v3 = vld [vmem:[#allocation5 + $0x5f0] sm:$0xff]  ;;  %362 = vmatpush.msrb.mxu0 %v230_v62  ;;  %308 = vmatpush.msra.mxu1 %v104_v0  ;;  %v260_v7 = vld [vmem:[#allocation5 + $0x5e0] sm:$0xff]  ;;  %v107_v0 = vld [vmem:[#allocation5 + $0x118] sm:$0xff] }
  0x31   :  { %408 = vmatpush.msrb.mxu2 %v103_v63  ;;  %354 = vmatpush.msra.mxu3 %v168_v1  ;;  %v226_v6 = vld [vmem:[#allocation5 + $0x4d0] sm:$0xff]  ;;  %v224_v10 = vld [vmem:[#allocation5 + $0x4c0] sm:$0xff]  ;;  %v73_v63 = vld [vmem:[#allocation5 + $0x8] sm:$0xff] }
  0x32   :  { %363 = vmatpush.msrb.mxu0 %v228_v2  ;;  %385 = vmatpush.msrb.mxu1 %v262_v3  ;;  %v258_v11 = vld [vmem:[#allocation5 + $0x5d0] sm:$0xff]  ;;  %v256_v15 = vld [vmem:[#allocation5 + $0x5c0] sm:$0xff]  ;;  %v167_v1 = vld [vmem:[#allocation5 + $0x2f8] sm:$0xff] }
  0x33   :  { %409 = vmatpush.msrb.mxu2 %v101_v4  ;;  %431 = vmatpush.msrb.mxu3 %v135_v5  ;;  %v222_v14 = vld [vmem:[#allocation5 + $0x4b0] sm:$0xff]  ;;  %v220_v18 = vld [vmem:[#allocation5 + $0x4a0] sm:$0xff]  ;;  %v231_v2 = vld [vmem:[#allocation5 + $0x4f8] sm:$0xff] }
  0x34   :  { %364 = vmatpush.msrb.mxu0 %v226_v6  ;;  %386 = vmatpush.msrb.mxu1 %v260_v7  ;;  %v254_v19 = vld [vmem:[#allocation5 + $0x5b0] sm:$0xff]  ;;  %v252_v23 = vld [vmem:[#allocation5 + $0x5a0] sm:$0xff]  ;;  %v731_v4 = vld [vmem:[#allocation2 + $0x18] sm:$0xff] }
  0x35   :  { %410 = vmatpush.msrb.mxu2 %v99_v8  ;;  %432 = vmatpush.msrb.mxu3 %v133_v9  ;;  %v218_v22 = vld [vmem:[#allocation5 + $0x490] sm:$0xff]  ;;  %v216_v26 = vld [vmem:[#allocation5 + $0x480] sm:$0xff]  ;;  %v105_v6 = vld [vmem:[#allocation5 + $0x108] sm:$0xff] }
  0x36   :  { %365 = vmatpush.msrb.mxu0 %v224_v10  ;;  %387 = vmatpush.msrb.mxu1 %v258_v11  ;;  %v250_v27 = vld [vmem:[#allocation5 + $0x590] sm:$0xff]  ;;  %v248_v31 = vld [vmem:[#allocation5 + $0x580] sm:$0xff]  ;;  %v165_v7 = vld [vmem:[#allocation5 + $0x2e8] sm:$0xff] }
  0x37   :  { %411 = vmatpush.msrb.mxu2 %v97_v12  ;;  %433 = vmatpush.msrb.mxu3 %v131_v13  ;;  %v214_v30 = vld [vmem:[#allocation5 + $0x470] sm:$0xff]  ;;  %v212_v34 = vld [vmem:[#allocation5 + $0x460] sm:$0xff]  ;;  %v199_v8 = vld [vmem:[#allocation5 + $0x3f8] sm:$0xff] }
  0x38   :  { %366 = vmatpush.msrb.mxu0 %v222_v14  ;;  %388 = vmatpush.msrb.mxu1 %v256_v15  ;;  %v246_v35 = vld [vmem:[#allocation5 + $0x570] sm:$0xff]  ;;  %v244_v39 = vld [vmem:[#allocation5 + $0x560] sm:$0xff]  ;;  %v229_v9 = vld [vmem:[#allocation5 + $0x4e8] sm:$0xff] }
  0x39   :  { %412 = vmatpush.msrb.mxu2 %v95_v16  ;;  %434 = vmatpush.msrb.mxu3 %v129_v17  ;;  %v210_v38 = vld [vmem:[#allocation5 + $0x450] sm:$0xff]  ;;  %v208_v42 = vld [vmem:[#allocation5 + $0x440] sm:$0xff]  ;;  %v263_v10 = vld [vmem:[#allocation5 + $0x5f8] sm:$0xff] }
  0x3a   :  { %367 = vmatpush.msrb.mxu0 %v220_v18  ;;  %389 = vmatpush.msrb.mxu1 %v254_v19  ;;  %v242_v43 = vld [vmem:[#allocation5 + $0x550] sm:$0xff]  ;;  %v720_v46 = vld [vmem:[#allocation2] sm:$0xff]  ;;  %v735_v11 = vld [vmem:[#allocation2 + $0x38] sm:$0xff] }
  0x3b   :  { %413 = vmatpush.msrb.mxu2 %v93_v20  ;;  %435 = vmatpush.msrb.mxu3 %v127_v21  ;;  %v240_v47 = vld [vmem:[#allocation5 + $0x540] sm:$0xff]  ;;  %v206_v48 = vld [vmem:[#allocation5 + $0x430] sm:$0xff]  ;;  %v163_v12 = vld [vmem:[#allocation5 + $0x2d8] sm:$0xff] }
  0x3c   :  { %368 = vmatpush.msrb.mxu0 %v218_v22  ;;  %390 = vmatpush.msrb.mxu1 %v252_v23  ;;  %v204_v52 = vld [vmem:[#allocation5 + $0x420] sm:$0xff]  ;;  %v238_v53 = vld [vmem:[#allocation5 + $0x530] sm:$0xff]  ;;  %v197_v13 = vld [vmem:[#allocation5 + $0x3e8] sm:$0xff] }
  0x3d   :  { %414 = vmatpush.msrb.mxu2 %v91_v24  ;;  %436 = vmatpush.msrb.mxu3 %v125_v25  ;;  %v202_v56 = vld [vmem:[#allocation5 + $0x410] sm:$0xff]  ;;  %v236_v57 = vld [vmem:[#allocation5 + $0x520] sm:$0xff]  ;;  %v227_v14 = vld [vmem:[#allocation5 + $0x4d8] sm:$0xff] }
  0x3e   :  { %369 = vmatpush.msrb.mxu0 %v216_v26  ;;  %391 = vmatpush.msrb.mxu1 %v250_v27  ;;  %v726_v60 = vld [vmem:[#allocation2 + $0x10] sm:$0xff]  ;;  %v200_v61 = vld [vmem:[#allocation5 + $0x400] sm:$0xff]  ;;  %v261_v15 = vld [vmem:[#allocation5 + $0x5e8] sm:$0xff] }
  0x3f   :  { %415 = vmatpush.msrb.mxu2 %v89_v28  ;;  %437 = vmatpush.msrb.mxu3 %v123_v29  ;;  %v234_v62 = vld [vmem:[#allocation5 + $0x510] sm:$0xff]  ;;  %v232_v5 = vld [vmem:[#allocation5 + $0x500] sm:$0xff]  ;;  %v161_v16 = vld [vmem:[#allocation5 + $0x2c8] sm:$0xff] }
  0x40   :  { %370 = vmatpush.msrb.mxu0 %v214_v30  ;;  %392 = vmatpush.msrb.mxu1 %v248_v31  ;;  %v729_v3 = vld [vmem:[#allocation2 + $0x30] sm:$0xff]  ;;  %v195_v17 = vld [vmem:[#allocation5 + $0x3d8] sm:$0xff]  ;;  %v225_v18 = vld [vmem:[#allocation5 + $0x4c8] sm:$0xff] }
  0x41   :  { %416 = vmatpush.msrb.mxu2 %v87_v32  ;;  %438 = vmatpush.msrb.mxu3 %v121_v33  ;;  %v259_v19 = vld [vmem:[#allocation5 + $0x5d8] sm:$0xff]  ;;  %v738_v20 = vld [vmem:[#allocation2 + $0x40] sm:$0xff]  ;;  %v193_v22 = vld [vmem:[#allocation5 + $0x3c8] sm:$0xff] }
  0x42   :  { %371 = vmatpush.msrb.mxu0 %v212_v34  ;;  %393 = vmatpush.msrb.mxu1 %v246_v35  ;;  %v159_v21 = vld [vmem:[#allocation5 + $0x2b8] sm:$0xff]  ;;  %v257_v24 = vld [vmem:[#allocation5 + $0x5c8] sm:$0xff]  ;;  %v740_v25 = vld [vmem:[#allocation2 + $0x20] sm:$0xff] }
  0x43   :  { %417 = vmatpush.msrb.mxu2 %v85_v36  ;;  %439 = vmatpush.msrb.mxu3 %v119_v37  ;;  %v223_v23 = vld [vmem:[#allocation5 + $0x4b8] sm:$0xff]  ;;  %v743_v26 = vld [vmem:[#allocation2 + $0x48] sm:$0xff] }
  0x44   :  { %372 = vmatpush.msrb.mxu0 %v210_v38  ;;  %394 = vmatpush.msrb.mxu1 %v244_v39  ;;  %v157_v27 = vld [vmem:[#allocation5 + $0x2a8] sm:$0xff]  ;;  %v191_v28 = vld [vmem:[#allocation5 + $0x3b8] sm:$0xff] }
  0x45   :  { %418 = vmatpush.msrb.mxu2 %v83_v40  ;;  %440 = vmatpush.msrb.mxu3 %v117_v41  ;;  %v221_v29 = vld [vmem:[#allocation5 + $0x4a8] sm:$0xff]  ;;  %v255_v30 = vld [vmem:[#allocation5 + $0x5b8] sm:$0xff] }
  0x46   :  { %373 = vmatpush.msrb.mxu0 %v208_v42  ;;  %395 = vmatpush.msrb.mxu1 %v242_v43  ;;  %v746_v31 = vld [vmem:[#allocation2 + $0x28] sm:$0xff]  ;;  %v155_v32 = vld [vmem:[#allocation5 + $0x298] sm:$0xff] }
  0x47   :  { %419 = vmatpush.msrb.mxu2 %v81_v44  ;;  %441 = vmatpush.msrb.mxu3 %v115_v45  ;;  %v189_v33 = vld [vmem:[#allocation5 + $0x3a8] sm:$0xff]  ;;  %v219_v34 = vld [vmem:[#allocation5 + $0x498] sm:$0xff]  ;;  %v750_v44 = vld [vmem:[#allocation2 + $0x50] sm:$0xff] }
  0x48   :  { %286 = vmatmul.f32.vlgmr.msra.gmra.mxu0 %v720_v46  ;;  %396 = vmatpush.msrb.mxu1 %v240_v47  ;;  %v253_v35 = vld [vmem:[#allocation5 + $0x5a8] sm:$0xff]  ;;  %v187_v37 = vld [vmem:[#allocation5 + $0x398] sm:$0xff] }
  0x49   :  { %374 = vmatpush.msrb.mxu0 %v206_v48  ;;  %420 = vmatpush.msrb.mxu2 %v79_v49  ;;  %v153_v36 = vld [vmem:[#allocation5 + $0x288] sm:$0xff]  ;;  %v251_v39 = vld [vmem:[#allocation5 + $0x598] sm:$0xff] }
  0x4a   :  { %442 = vmatpush.msrb.mxu3 %v113_v50  ;;  %309 = vmatmul.f32.vlgmr.msra.gmra.mxu1 %v722_v51  ;;  %v217_v38 = vld [vmem:[#allocation5 + $0x488] sm:$0xff]  ;;  %v151_v40 = vld [vmem:[#allocation5 + $0x278] sm:$0xff] }
  0x4b   :  { %375 = vmatpush.msrb.mxu0 %v204_v52  ;;  %397 = vmatpush.msrb.mxu1 %v238_v53  ;;  %v185_v41 = vld [vmem:[#allocation5 + $0x388] sm:$0xff]  ;;  %v215_v42 = vld [vmem:[#allocation5 + $0x478] sm:$0xff] }
  0x4c   :  { %421 = vmatpush.msrb.mxu2 %v77_v54  ;;  %443 = vmatpush.msrb.mxu3 %v111_v55  ;;  %v249_v43 = vld [vmem:[#allocation5 + $0x588] sm:$0xff]  ;;  %v183_v47 = vld [vmem:[#allocation5 + $0x378] sm:$0xff] }
  0x4d   :  { %376 = vmatpush.msrb.mxu0 %v202_v56  ;;  %398 = vmatpush.msrb.mxu1 %v236_v57  ;;  %v149_v45 = vld [vmem:[#allocation5 + $0x268] sm:$0xff]  ;;  %v247_v49 = vld [vmem:[#allocation5 + $0x578] sm:$0xff] }
  0x4e   :  { %422 = vmatpush.msrb.mxu2 %v75_v58  ;;  %444 = vmatpush.msrb.mxu3 %v109_v59  ;;  %v213_v48 = vld [vmem:[#allocation5 + $0x468] sm:$0xff]  ;;  %v754_v50 = vld [vmem:[#allocation2 + $0x58] sm:$0xff] }
  0x4f   :  { %332 = vmatmul.f32.vlgmr.msra.gmra.mxu2 %v726_v60  ;;  %377 = vmatpush.msrb.mxu0 %v200_v61  ;;  %v147_v52 = vld [vmem:[#allocation5 + $0x258] sm:$0xff]  ;;  %v181_v53 = vld [vmem:[#allocation5 + $0x368] sm:$0xff] }
  0x50   :  { %399 = vmatpush.msrb.mxu1 %v234_v62  ;;  %423 = vmatpush.msrb.mxu2 %v73_v63  ;;  %v245_v54 = vld [vmem:[#allocation5 + $0x568] sm:$0xff]  ;;  %v179_v56 = vld [vmem:[#allocation5 + $0x358] sm:$0xff] }
  0x51   :  { %445 = vmatpush.msrb.mxu3 %v107_v0  ;;  %454 = vmatpush.msra.mxu0 %v167_v1  ;;  %v145_v55 = vld [vmem:[#allocation5 + $0x248] sm:$0xff]  ;;  %v243_v58 = vld [vmem:[#allocation5 + $0x558] sm:$0xff] }
  0x52   :  { %500 = vmatpush.msra.mxu2 %v231_v2  ;;  %289 = vmatmul.f32.gmra.mxu0 %v729_v3  ;;  %v209_v57 = vld [vmem:[#allocation5 + $0x448] sm:$0xff]  ;;  %v143_v59 = vld [vmem:[#allocation5 + $0x238] sm:$0xff] }
  0x53   :  { %355 = vmatmul.f32.vlgmr.msra.gmra.mxu3 %v731_v4  ;;  %400 = vmatpush.msrb.mxu1 %v232_v5  ;;  %v207_v61 = vld [vmem:[#allocation5 + $0x438] sm:$0xff]  ;;  %v241_v62 = vld [vmem:[#allocation5 + $0x548] sm:$0xff] }
  0x54   :  { %446 = vmatpush.msrb.mxu3 %v105_v6  ;;  %455 = vmatpush.msra.mxu0 %v165_v7  ;;  %v141_v63 = vld [vmem:[#allocation5 + $0x228] sm:$0xff]  ;;  %v175_v0 = vld [vmem:[#allocation5 + $0x338] sm:$0xff] }
  0x55   :  { %477 = vmatpush.msra.mxu1 %v199_v8  ;;  %501 = vmatpush.msra.mxu2 %v229_v9  ;;  %v205_v1 = vld [vmem:[#allocation5 + $0x428] sm:$0xff]  ;;  %v239_v2 = vld [vmem:[#allocation5 + $0x538] sm:$0xff] }
  0x56   :  { %523 = vmatpush.msra.mxu3 %v263_v10  ;;  %312 = vmatmul.f32.gmra.mxu1 %v735_v11  ;;  %v139_v5 = vld [vmem:[#allocation5 + $0x218] sm:$0xff]  ;;  %v173_v6 = vld [vmem:[#allocation5 + $0x328] sm:$0xff] }
  0x57   :  { %456 = vmatpush.msra.mxu0 %v163_v12  ;;  %478 = vmatpush.msra.mxu1 %v197_v13  ;;  %v203_v7 = vld [vmem:[#allocation5 + $0x418] sm:$0xff]  ;;  %v237_v8 = vld [vmem:[#allocation5 + $0x528] sm:$0xff] }
  0x58   :  { %502 = vmatpush.msra.mxu2 %v227_v14  ;;  %524 = vmatpush.msra.mxu3 %v261_v15  ;;  %v137_v9 = vld [vmem:[#allocation5 + $0x208] sm:$0xff]  ;;  %v171_v10 = vld [vmem:[#allocation5 + $0x318] sm:$0xff] }
  0x59   :  { %457 = vmatpush.msra.mxu0 %v161_v16  ;;  %479 = vmatpush.msra.mxu1 %v195_v17  ;;  %v235_v12 = vld [vmem:[#allocation5 + $0x518] sm:$0xff]  ;;  %v169_v13 = vld [vmem:[#allocation5 + $0x308] sm:$0xff] }
  0x5a   :  { %503 = vmatpush.msra.mxu2 %v225_v18  ;;  %525 = vmatpush.msra.mxu3 %v259_v19  ;;  %v233_v14 = vld [vmem:[#allocation5 + $0x508] sm:$0xff] }
  0x5b   :  { %335 = vmatmul.f32.gmra.mxu2 %v738_v20  ;;  %458 = vmatpush.msra.mxu0 %v159_v21 }
  0x5c   :  { %480 = vmatpush.msra.mxu1 %v193_v22  ;;  %504 = vmatpush.msra.mxu2 %v223_v23 }
  0x5d   :  { %526 = vmatpush.msra.mxu3 %v257_v24  ;;  %378 = vmatmul.f32.vlgmr.msrb.gmra.mxu0 %v740_v25 }
  0x5e   :  { %358 = vmatmul.f32.gmra.mxu3 %v743_v26  ;;  %459 = vmatpush.msra.mxu0 %v157_v27 }
  0x5f   :  { %481 = vmatpush.msra.mxu1 %v191_v28  ;;  %505 = vmatpush.msra.mxu2 %v221_v29 }
  0x60   :  { %527 = vmatpush.msra.mxu3 %v255_v30  ;;  %401 = vmatmul.f32.vlgmr.msrb.gmra.mxu1 %v746_v31 }
  0x61   :  { %460 = vmatpush.msra.mxu0 %v155_v32  ;;  %482 = vmatpush.msra.mxu1 %v189_v33 }
  0x62   :  { %506 = vmatpush.msra.mxu2 %v219_v34  ;;  %528 = vmatpush.msra.mxu3 %v253_v35 }
  0x63   :  { %461 = vmatpush.msra.mxu0 %v153_v36  ;;  %483 = vmatpush.msra.mxu1 %v187_v37 }
  0x64   :  { %507 = vmatpush.msra.mxu2 %v217_v38  ;;  %529 = vmatpush.msra.mxu3 %v251_v39 }
  0x65   :  { %424 = vmatmul.f32.vlgmr.msrb.gmra.mxu2 %v720_v46  ;;  %462 = vmatpush.msra.mxu0 %v151_v40  ;;  %v211_v46 = vld [vmem:[#allocation5 + $0x458] sm:$0xff] }
  0x66   :  { %484 = vmatpush.msra.mxu1 %v185_v41  ;;  %508 = vmatpush.msra.mxu2 %v215_v42 }
  0x67   :  { %530 = vmatpush.msra.mxu3 %v249_v43  ;;  %381 = vmatmul.f32.gmra.mxu0 %v750_v44 }
  0x68   :  { %447 = vmatmul.f32.vlgmr.msrb.gmra.mxu3 %v722_v51  ;;  %463 = vmatpush.msra.mxu0 %v149_v45  ;;  %v177_v51 = vld [vmem:[#allocation5 + $0x348] sm:$0xff] }
  0x69   :  { %485 = vmatpush.msra.mxu1 %v183_v47  ;;  %509 = vmatpush.msra.mxu2 %v213_v48 }
  0x6a   :  { %531 = vmatpush.msra.mxu3 %v247_v49  ;;  %404 = vmatmul.f32.gmra.mxu1 %v754_v50 }
  0x6b   :  { %464 = vmatpush.msra.mxu0 %v147_v52  ;;  %486 = vmatpush.msra.mxu1 %v181_v53 }
  0x6c   :  { %510 = vmatpush.msra.mxu2 %v211_v46  ;;  %532 = vmatpush.msra.mxu3 %v245_v54 }
  0x6d   :  { %465 = vmatpush.msra.mxu0 %v145_v55  ;;  %487 = vmatpush.msra.mxu1 %v179_v56 }
  0x6e   :  { %511 = vmatpush.msra.mxu2 %v209_v57  ;;  %533 = vmatpush.msra.mxu3 %v243_v58 }
  0x6f   :  { %427 = vmatmul.f32.gmra.mxu2 %v729_v3  ;;  %466 = vmatpush.msra.mxu0 %v143_v59  ;;  %v201_v3 = vld [vmem:[#allocation5 + $0x408] sm:$0xff] }
  0x70   :  { %488 = vmatpush.msra.mxu1 %v177_v51  ;;  %512 = vmatpush.msra.mxu2 %v207_v61 }
  0x71   :  { %534 = vmatpush.msra.mxu3 %v241_v62  ;;  %467 = vmatpush.msra.mxu0 %v141_v63 }
  0x72   :  { %450 = vmatmul.f32.gmra.mxu3 %v735_v11  ;;  %489 = vmatpush.msra.mxu1 %v175_v0  ;;  %v264_v11 = vld [vmem:[#allocation7] sm:$0x3] }
  0x73   :  { %513 = vmatpush.msra.mxu2 %v205_v1  ;;  %535 = vmatpush.msra.mxu3 %v239_v2  ;;  %v266_v16 = vperm.slane %v264_v11, 0  ;;  %v267_v40 = vperm.slane %v264_v11, 1 }
  0x74   :  { %468 = vmatpush.msra.mxu0 %v139_v5  ;;  %490 = vmatpush.msra.mxu1 %v173_v6 }
  0x75   :  { %514 = vmatpush.msra.mxu2 %v203_v7  ;;  %536 = vmatpush.msra.mxu3 %v237_v8 }
  0x76   :  { %469 = vmatpush.msra.mxu0 %v137_v9  ;;  %491 = vmatpush.msra.mxu1 %v171_v10 }
  0x77   :  { %515 = vmatpush.msra.mxu2 %v201_v3  ;;  %537 = vmatpush.msra.mxu3 %v235_v12 }
  0x78   :  { %470 = vmatmul.f32.vlgmr.msra.gmra.mxu0 %v726_v60  ;;  %516 = vmatmul.f32.vlgmr.msra.gmra.mxu2 %v740_v25 }
  0x79   :  { %492 = vmatpush.msra.mxu1 %v169_v13  ;;  %538 = vmatpush.msra.mxu3 %v233_v14 }
  0x7a   :  { %493 = vmatmul.f32.vlgmr.msra.gmra.mxu1 %v731_v4  ;;  %539 = vmatmul.f32.vlgmr.msra.gmra.mxu3 %v746_v31 }
  0x80   :  { %473 = vmatmul.f32.gmra.mxu0 %v738_v20  ;;  %519 = vmatmul.f32.gmra.mxu2 %v750_v44 }
  0x82   :  { %496 = vmatmul.f32.gmra.mxu1 %v743_v26  ;;  %542 = vmatmul.f32.gmra.mxu3 %v754_v50 }
  0xc5   :  { %v287_v15 = vpop.f32.mrf.mxu0 }
  0xc6   :  { %v288_v17 = vadd.f32 %v287_v15, %v266_v16 }
  0xc7   :  { %v310_v60 = vpop.f32.mrf.mxu1 }
  0xc8   :  { %v311_v18 = vadd.f32 %v310_v60, %v288_v17 }
  0xcf   :  { %v290_v19 = vpop.f32.mrf.mxu0 }
  0xd0   :  { %v291_v24 = vadd.f32 %v290_v19, %v266_v16 }
  0xd2   :  { %v333_v21 = vpop.f32.mrf.mxu2 }
  0xd3   :  { %v313_v22 = vpop.f32.mrf.mxu1  ;;  %v334_v4 = vadd.f32 %v333_v21, %v311_v18 }
  0xd4   :  { %v314_v27 = vadd.f32 %v313_v22, %v291_v24 }
  0xd6   :  { %v356_v23 = vpop.f32.mrf.mxu3 }
  0xd7   :  { %v357_v25 = vadd.f32 %v356_v23, %v334_v4 }
  0xda   :  { %v379_v20 = vpop.f32.mrf.mxu0 }
  0xdb   :  { %v380_v28 = vadd.f32 %v379_v20, %v357_v25 }
  0xdd   :  { %v402_v29 = vpop.f32.mrf.mxu1 }
  0xde   :  { %v403_v26 = vadd.f32 %v402_v29, %v380_v28  ;;  %v336_v30 = vpop.f32.mrf.mxu2 }
  0xdf   :  { %v337_v31 = vadd.f32 %v336_v30, %v314_v27 }
  0xe0   :  { %546 = vst [vmem:[#allocation8] sm:$0xff] %v403_v26 }
  0xe1   :  { %v359_v32 = vpop.f32.mrf.mxu3 }
  0xe2   :  { %v360_v33 = vadd.f32 %v359_v32, %v337_v31 }
  0xe4   :  { %v382_v34 = vpop.f32.mrf.mxu0 }
  0xe5   :  { %v383_v35 = vadd.f32 %v382_v34, %v360_v33 }
  0xe7   :  { %v405_v36 = vpop.f32.mrf.mxu1 }
  0xe8   :  { %v406_v37 = vadd.f32 %v405_v36, %v383_v35  ;;  %v425_v38 = vpop.f32.mrf.mxu2 }
  0xe9   :  { %v426_v41 = vadd.f32 %v425_v38, %v267_v40 }
  0xea   :  { %548 = vst [vmem:[#allocation8 + $0x10] sm:$0xff] %v406_v37 }
  0xeb   :  { %v448_v39 = vpop.f32.mrf.mxu3 }
  0xec   :  { %v449_v43 = vadd.f32 %v448_v39, %v426_v41 }
  0xf2   :  { %v428_v42 = vpop.f32.mrf.mxu2 }
  0xf3   :  { %v429_v49 = vadd.f32 %v428_v42, %v267_v40 }
  0xf5   :  { %v451_v44 = vpop.f32.mrf.mxu3  ;;  %v471_v45 = vpop.f32.mrf.mxu0 }
  0xf6   :  { %v472_v47 = vadd.f32 %v471_v45, %v449_v43  ;;  %v452_v53 = vadd.f32 %v451_v44, %v429_v49 }
  0xf7   :  { %v494_v48 = vpop.f32.mrf.mxu1 }
  0xf8   :  { %v495_v50 = vadd.f32 %v494_v48, %v472_v47 }
  0xfb   :  { %v517_v52 = vpop.f32.mrf.mxu2 }
  0xfc   :  { %v518_v46 = vadd.f32 %v517_v52, %v495_v50 }
  0xfd   :  { %v474_v54 = vpop.f32.mrf.mxu0  ;;  %v540_v55 = vpop.f32.mrf.mxu3 }
  0xfe   :  { %v475_v56 = vadd.f32 %v474_v54, %v452_v53  ;;  %v541_v57 = vadd.f32 %v540_v55, %v518_v46 }
  0xff   :  { %v497_v58 = vpop.f32.mrf.mxu1 }
 0x100   :  { %547 = vst [vmem:[#allocation8 + $0x8] sm:$0xff] %v541_v57  ;;  %v498_v59 = vadd.f32 %v497_v58, %v475_v56 }
 0x103   :  { %v520_v51 = vpop.f32.mrf.mxu2 }
 0x104   :  { %v521_v61 = vadd.f32 %v520_v51, %v498_v59 }
 0x105   :  { %v543_v62 = vpop.f32.mrf.mxu3 }
 0x106   :  { %v544_v63 = vadd.f32 %v543_v62, %v521_v61 }
 0x108   :  { %549 = vst [vmem:[#allocation8 + $0x18] sm:$0xff] %v544_v63 }
 0x109   :  { %562 = dma.vmem_to_hbm [thread:$0]  %s555_s29, 512, %s557_s5, [#allocation4], %s681_s20, %s681_s20, %s682_s21  }
 0x10a   :  { %678 = dma.done.wait [#allocation4], 512  }
 0x10b   :  { %679 = vsyncadd [#allocation4], 4294966784 }
 0x10c   :  { %567 = vsyncpa [#allocation3], 1 }
 0x10d   :  { %568 = vsyncpa [#allocation6], 1 }
 0x10e   :  { %569 = vsyncpa [#allocation4], 1 }

</bundles_post_ra>
